<compile_context>
chip_gen: v5e
topology: v5e:2x2
jax: 0.10.0
libtpu: 0.0.40
codegen_flags: <defaults>
</compile_context>

<pallas_src>
import math
from functools import partial

import jax
import jax.numpy as jnp
from jax import lax
from jax.experimental import pallas as pl
from jax.experimental.pallas import tpu as pltpu

LANE = 128


def _round_up(x, m):
    return (x + m - 1) // m * m


# ---------------------------------------------------------------------------
# Kernel 1: fused QKV projection -> three de-interleaved (M, Dp) outputs
# ---------------------------------------------------------------------------
def _qkv_proj_kernel(x_ref, w_ref, q_ref, k_ref, v_ref, *, dp):
    acc = jnp.dot(x_ref[...], w_ref[...], preferred_element_type=jnp.float32)
    # Static, lane-aligned (multiples of 128) slices of the (tm, 3*Dp) result.
    q_ref[...] = acc[:, :dp].astype(q_ref.dtype)
    k_ref[...] = acc[:, dp:2 * dp].astype(k_ref.dtype)
    v_ref[...] = acc[:, 2 * dp:3 * dp].astype(v_ref.dtype)


def _qkv_projection(x2d, wqkv, dp, *, tm):
    M, d_in = x2d.shape
    n3 = wqkv.shape[1]
    return pl.pallas_call(
        partial(_qkv_proj_kernel, dp=dp),
        out_shape=(
            jax.ShapeDtypeStruct((M, dp), jnp.bfloat16),
            jax.ShapeDtypeStruct((M, dp), jnp.bfloat16),
            jax.ShapeDtypeStruct((M, dp), jnp.bfloat16),
        ),
        grid_spec=pltpu.PrefetchScalarGridSpec(
            num_scalar_prefetch=0,
            grid=(M // tm,),
            in_specs=[
                pl.BlockSpec((tm, d_in), lambda i: (i, 0)),
                # Constant-index weight block (tiny here; single-buffering it via
                # pl.Buffered(1) only matters on v7x when d_in is large).
                pl.BlockSpec((d_in, n3), lambda i: (0, 0)),
            ],
            out_specs=(
                pl.BlockSpec((tm, dp), lambda i: (i, 0)),
                pl.BlockSpec((tm, dp), lambda i: (i, 0)),
                pl.BlockSpec((tm, dp), lambda i: (i, 0)),
            ),
        ),
        compiler_params=pltpu.CompilerParams(dimension_semantics=("parallel",)),
    )(x2d, wqkv)


# ---------------------------------------------------------------------------
# Kernel 2: flash-style causal attention over a lower-triangular (qi, ki) grid
# ---------------------------------------------------------------------------
def _flash_kernel(qi_ref, ki_ref, q_ref, k_ref, v_ref, o_ref,
                  m_sc, l_sc, acc_sc, *, tq, tk):
    p = pl.program_id(1)
    qi = qi_ref[p]   # q-tile index of this grid step (SMEM scalar read)
    ki = ki_ref[p]   # kv-tile index; by construction ki <= qi

    @pl.when(ki == 0)
    def _():
        # Finite init (avoids -inf - -inf NaN hazard).
        m_sc[...] = jnp.full_like(m_sc, -1e30)
        l_sc[...] = jnp.zeros_like(l_sc)
        acc_sc[...] = jnp.zeros_like(acc_sc)

    # Scores: contraction on the last dims of both operands (no k.T relayout).
    # Softmax scale already folded into W_query in the wrapper.
    s = jnp.einsum(
        "bqd,bkd->bqk", q_ref[...], k_ref[...],
        preferred_element_type=jnp.float32,
    )  # (Bb, tq, tk) f32

    def online_softmax_update(scores):
        m_prev = m_sc[...]
        m_new = jnp.maximum(m_prev, scores.max(axis=-1, keepdims=True))
        alpha = jnp.exp(m_prev - m_new)
        pmat = jnp.exp(scores - m_new)
        l_sc[...] = alpha * l_sc[...] + pmat.sum(axis=-1, keepdims=True)
        acc_sc[...] = alpha * acc_sc[...] + jnp.einsum(
            "bqk,bkd->bqd", pmat.astype(v_ref.dtype), v_ref[...],
            preferred_element_type=jnp.float32,
        )
        m_sc[...] = m_new

    # Strictly-below-diagonal blocks: everything is visible, no mask work at all.
    @pl.when(ki < qi)
    def _():
        online_softmax_update(s)

    # Diagonal-straddling block (ki == qi, so q_start == k_start since tq == tk):
    # the causal mask reduces to the static local upper-triangular pattern.
    # This is also the last kv block for this q row -> finalize here.
    @pl.when(ki == qi)
    def _():
        row = lax.broadcasted_iota(jnp.int32, (tq, tk), 0)
        col = lax.broadcasted_iota(jnp.int32, (tq, tk), 1)
        online_softmax_update(
            jnp.where((col > row)[None, :, :], jnp.float32(-1e30), s))
        inv_l = pl.reciprocal(l_sc[...], approx=True)  # EUP slot, off the VALU path
        o_ref[...] = (acc_sc[...] * inv_l).astype(o_ref.dtype)


# ---------------------------------------------------------------------------
# Wrapper
# ---------------------------------------------------------------------------
def causal_attention(x, w_query, w_key, w_value):
    """x: (B, T, d_in); w_*: (d_out, d_in) torch-Linear-style weights."""
    B, T, d_in = x.shape
    d_out = w_query.shape[0]
    scale = 1.0 / math.sqrt(d_out)

    Dp = _round_up(d_out, LANE)  # lane-dense Q/K/V/ctx feature width

    # Fuse + transpose + zero-pad the three weights into one (d_in, 3*Dp) matrix.
    # Scale folded into W_query (numerically identical, removes a (T,T) multiply).
    def pad_t(w, s=1.0):
        wt = (w.T.astype(jnp.float32)) * s          # (d_in, d_out)
        return jnp.pad(wt, ((0, 0), (0, Dp - d_out)))

    wqkv = jnp.concatenate(
        [pad_t(w_query, scale), pad_t(w_key), pad_t(w_value)], axis=1
    ).astype(jnp.bfloat16)                           # (d_in, 3*Dp)

    # ---- fused QKV projection (bf16 MXU inputs, f32 accumulation) ----
    M = B * T
    x2d = x.reshape(M, d_in).astype(jnp.bfloat16)
    if M <= 1024:
        tm = M
    else:
        tm = next((c for c in (1024, 512, 256) if M % c == 0), None)
        assert tm is not None, "B*T must be divisible by 256 for large inputs"
    q2d, k2d, v2d = _qkv_projection(x2d, wqkv, Dp, tm=tm)   # 3x (B*T, Dp) bf16
    q = q2d.reshape(B, T, Dp)
    k = k2d.reshape(B, T, Dp)
    v = v2d.reshape(B, T, Dp)

    # ---- flash-style tiled attention over a lower-triangular pair grid ----
    if T <= 256:
        tq = T                                      # single tile per batch row
    else:
        tq = next((c for c in (256, 128) if T % c == 0), None)
        assert tq is not None, "T must be divisible by 128 when T > 256"
    tk = tq
    nq = T // tq

    # Batch rows per grid step. 1 for long sequences (big lane-dense tiles and
    # >=2 parallel steps for v7x's two TensorCores); group batches for tiny T
    # to amortize per-step overhead.
    if T >= 128:
        Bb = 1
    else:
        Bb = max(1, min(B, 256 // max(T, 1)))
        while B % Bb:
            Bb -= 1

    # Lower-triangular (qi, ki) pairs, grouped by qi so the output block stays
    # resident across each q row; causally-dead KV blocks are never enumerated,
    # so they cost neither DMA nor grid-step overhead.
    qi_list, ki_list = [], []
    for qi in range(nq):
        for ki in range(qi + 1):
            qi_list.append(qi)
            ki_list.append(ki)
    qi_arr = jnp.asarray(qi_list, dtype=jnp.int32)
    ki_arr = jnp.asarray(ki_list, dtype=jnp.int32)
    n_pairs = len(qi_list)

    out_padded = pl.pallas_call(
        partial(_flash_kernel, tq=tq, tk=tk),
        out_shape=jax.ShapeDtypeStruct((B, T, Dp), jnp.bfloat16),
        grid_spec=pltpu.PrefetchScalarGridSpec(
            num_scalar_prefetch=2,                   # qi_arr, ki_arr -> SMEM
            grid=(B // Bb, n_pairs),
            in_specs=[
                pl.BlockSpec((Bb, tq, Dp), lambda b, p, qi_a, ki_a: (b, qi_a[p], 0)),  # Q
                pl.BlockSpec((Bb, tk, Dp), lambda b, p, qi_a, ki_a: (b, ki_a[p], 0)),  # K
                pl.BlockSpec((Bb, tk, Dp), lambda b, p, qi_a, ki_a: (b, ki_a[p], 0)),  # V
            ],
            out_specs=pl.BlockSpec((Bb, tq, Dp), lambda b, p, qi_a, ki_a: (b, qi_a[p], 0)),
            scratch_shapes=[
                pltpu.VMEM((Bb, tq, 1), jnp.float32),   # running max
                pltpu.VMEM((Bb, tq, 1), jnp.float32),   # running denom
                pltpu.VMEM((Bb, tq, Dp), jnp.float32),  # output accumulator
            ],
        ),
        compiler_params=pltpu.CompilerParams(
            dimension_semantics=("parallel", "arbitrary"),
        ),
    )(qi_arr, ki_arr, q, k, v)

    # TODO(synk): dropout on attention weights skipped (inference/eval semantics).
    # Downstream consumers could take the lane-dense padded (B, T, Dp) bf16 layout
    # directly; we slice/cast here only to match the module's output contract.
    return out_padded[:, :, :d_out].astype(x.dtype)


def causal_attention_ref(x, w_query, w_key, w_value):
    """Pure-JAX f32 reference mirroring the PyTorch forward (eval mode)."""
    B, T, d_in = x.shape
    d_out = w_query.shape[0]
    q = jnp.einsum("btd,od->bto", x, w_query)
    k = jnp.einsum("btd,od->bto", x, w_key)
    v = jnp.einsum("btd,od->bto", x, w_value)
    scores = jnp.einsum("bto,bso->bts", q, k) / math.sqrt(d_out)
    mask = jnp.triu(jnp.ones((T, T), dtype=bool), k=1)
    scores = jnp.where(mask[None], -jnp.inf, scores)
    attn = jax.nn.softmax(scores, axis=-1)
    return jnp.einsum("bts,bso->bto", attn, v)


if __name__ == "__main__":
    # Small shapes consistent with the module's forward: (batch, seq, hidden)
    B, T, d_in, d_out = 2, 8, 32, 32

    key = jax.random.PRNGKey(0)
    kx, kq, kk, kv = jax.random.split(key, 4)

    x = jax.random.normal(kx, (B, T, d_in), dtype=jnp.float32)

    # torch.nn.Linear-style init: U(-1/sqrt(d_in), 1/sqrt(d_in)), shape (d_out, d_in)
    bound = 1.0 / math.sqrt(d_in)
    w_query = jax.random.uniform(kq, (d_out, d_in), jnp.float32, -bound, bound)
    w_key = jax.random.uniform(kk, (d_out, d_in), jnp.float32, -bound, bound)
    w_value = jax.random.uniform(kv, (d_out, d_in), jnp.float32, -bound, bound)

    out = causal_attention(x, w_query, w_key, w_value)
    out = jax.block_until_ready(out)

    ref = causal_attention_ref(x, w_query, w_key, w_value)
    assert out.shape == (B, T, d_out)
    # bf16 MXU inputs / bf16 stores (f32 accumulation, f32 softmax) -> loosened
    # tolerance vs the f32 reference.
    max_diff = float(jnp.max(jnp.abs(out - ref)))
    assert jnp.allclose(out, ref, atol=5e-2, rtol=5e-2), f"mismatch vs ref (max {max_diff})"

    print("KERNEL_OK")
</pallas_src>

<mosaic_0001>
module attributes {stable_mosaic.version = 11 : i64} {
  func.func @_qkv_proj_kernel(%arg0: i32, %arg1: memref<16x32xbf16, #tpu.memory_space<vmem>>, %arg2: memref<32x384xbf16, #tpu.memory_space<vmem>>, %arg3: memref<16x128xbf16, #tpu.memory_space<vmem>>, %arg4: memref<16x128xbf16, #tpu.memory_space<vmem>>, %arg5: memref<16x128xbf16, #tpu.memory_space<vmem>>) attributes {dimension_semantics = [#tpu.dimension_semantics<parallel>], iteration_bounds = array<i64: 1>, scalar_prefetch = 0 : i64, scratch_operands = 0 : i64, tpu.core_type = #tpu.core_type<tc>, window_params = [{transform_indices = @transform_0, window_bounds = array<i64: 16, 32>}, {pipeline_mode = #tpu.pipeline_mode<synchronous>, transform_indices = @transform_1, window_bounds = array<i64: 32, 384>}, {transform_indices = @transform_2, window_bounds = array<i64: 16, 128>}, {transform_indices = @transform_3, window_bounds = array<i64: 16, 128>}, {transform_indices = @transform_4, window_bounds = array<i64: 16, 128>}]} {
    %c0 = arith.constant 0 : index
    %c0_0 = arith.constant 0 : index
    %0 = vector.load %arg1[%c0, %c0_0] : memref<16x32xbf16, #tpu.memory_space<vmem>>, vector<16x32xbf16>
    %c0_1 = arith.constant 0 : index
    %c0_2 = arith.constant 0 : index
    %1 = vector.load %arg2[%c0_1, %c0_2] : memref<32x384xbf16, #tpu.memory_space<vmem>>, vector<32x384xbf16>
    %cst = arith.constant dense<0.000000e+00> : vector<16x384xf32>
    %2 = tpu.matmul %0, %1, %cst {dimension_numbers = #tpu.dot_dimension_numbers<[1], [0], [0], [1], [0, 0, 1, 1], [], []>} : vector<16x32xbf16>, vector<32x384xbf16>, vector<16x384xf32> -> vector<16x384xf32>
    %3 = vector.extract_strided_slice %2 {offsets = [0, 0], sizes = [16, 128], strides = [1, 1]} : vector<16x384xf32> to vector<16x128xf32>
    %4 = arith.truncf %3 : vector<16x128xf32> to vector<16x128xbf16>
    %c0_3 = arith.constant 0 : index
    %c0_4 = arith.constant 0 : index
    %5 = vector.load %arg3[%c0_3, %c0_4] : memref<16x128xbf16, #tpu.memory_space<vmem>>, vector<16x128xbf16>
    tpu.vector_store %arg3[%c0_3, %c0_4], %4 {strides = array<i32>} : memref<16x128xbf16, #tpu.memory_space<vmem>>, vector<16x128xbf16>,
    %6 = vector.extract_strided_slice %2 {offsets = [0, 128], sizes = [16, 128], strides = [1, 1]} : vector<16x384xf32> to vector<16x128xf32>
    %7 = arith.truncf %6 : vector<16x128xf32> to vector<16x128xbf16>
    %c0_5 = arith.constant 0 : index
    %c0_6 = arith.constant 0 : index
    %8 = vector.load %arg4[%c0_5, %c0_6] : memref<16x128xbf16, #tpu.memory_space<vmem>>, vector<16x128xbf16>
    tpu.vector_store %arg4[%c0_5, %c0_6], %7 {strides = array<i32>} : memref<16x128xbf16, #tpu.memory_space<vmem>>, vector<16x128xbf16>,
    %9 = vector.extract_strided_slice %2 {offsets = [0, 256], sizes = [16, 128], strides = [1, 1]} : vector<16x384xf32> to vector<16x128xf32>
    %10 = arith.truncf %9 : vector<16x128xf32> to vector<16x128xbf16>
    %c0_7 = arith.constant 0 : index
    %c0_8 = arith.constant 0 : index
    %11 = vector.load %arg5[%c0_7, %c0_8] : memref<16x128xbf16, #tpu.memory_space<vmem>>, vector<16x128xbf16>
    tpu.vector_store %arg5[%c0_7, %c0_8], %10 {strides = array<i32>} : memref<16x128xbf16, #tpu.memory_space<vmem>>, vector<16x128xbf16>,
    return
  }
  func.func @transform_0(%arg0: i32) -> (i32, i32) {
    %c0_i32 = arith.constant 0 : i32
    %c0_i32_0 = arith.constant 0 : i32
    return %arg0, %c0_i32 : i32, i32
  }
  func.func @transform_1(%arg0: i32) -> (i32, i32) {
    %c0_i32 = arith.constant 0 : i32
    %c0_i32_0 = arith.constant 0 : i32
    %c0_i32_1 = arith.constant 0 : i32
    return %c0_i32, %c0_i32_0 : i32, i32
  }
  func.func @transform_2(%arg0: i32) -> (i32, i32) {
    %c0_i32 = arith.constant 0 : i32
    %c0_i32_0 = arith.constant 0 : i32
    return %arg0, %c0_i32 : i32, i32
  }
  func.func @transform_3(%arg0: i32) -> (i32, i32) {
    %c0_i32 = arith.constant 0 : i32
    %c0_i32_0 = arith.constant 0 : i32
    return %arg0, %c0_i32 : i32, i32
  }
  func.func @transform_4(%arg0: i32) -> (i32, i32) {
    %c0_i32 = arith.constant 0 : i32
    %c0_i32_0 = arith.constant 0 : i32
    return %arg0, %c0_i32 : i32, i32
  }
}

</mosaic_0001>

<bundles_post_ra>
// kernel: tpu_custom_call.1
= control target key start
LH: loop header
LB: loop body
LE: loop exit
PB: predicated region body
PF: predicated region fallthrough
CT: control target
= control target key end

     0   :  { %10 = vsyncpa [#allocation3], 0  ;;  %s460_s0 = inlined_call_operand.hbm [shape: bf16[16,32], index: 0, kind: input, shape index: {}]   ;;  %s461_s1 = inlined_call_operand.hbm [shape: bf16[32,384], index: 1, kind: input, shape index: {}]   ;;  %s462_s2 = inlined_call_operand.hbm [shape: bf16[16,128], index: 2, kind: output, shape index: {0}]   ;;  %s463_s3 = inlined_call_operand.hbm [shape: bf16[16,128], index: 3, kind: output, shape index: {1}]   ;;  %s464_s4 = inlined_call_operand.hbm [shape: bf16[16,128], index: 4, kind: output, shape index: {2}]  }
   0x1   :  { %11 = vsyncpa [#allocation6], 0 }
   0x2   :  { %12 = vsyncpa [#allocation4], 0 }
   0x3   :  { %13 = vsyncpa [#allocation9], 0  ;;  %s18_s17 = sshll.u32 %s460_s0, 4  ;;  %s399_s18 = smov [#allocation2]   ;;  %s19_s17 = int_to_ptr.hbm [resolvable:$true] %s18_s17 }
   0x4   :  { %s20_s19 = sshll.u32 %s399_s18, 4  ;;  %s31_s22 = sshll.u32 %s461_s1, 4  ;;  %s21_s19 = int_to_ptr.vmem [resolvable:$true] %s20_s19  ;;  %s32_s22 = int_to_ptr.hbm [resolvable:$true] %s31_s22 }
   0x5   :  { %s400_s23 = smov 64   ;;  %s401_s24 = smov 4  }
   0x6   :  { %26 = dma.hbm_to_vmem [thread:$0]  %s19_s17, 128, %s21_s19, [#allocation3], %s400_s23, %s400_s23, %s401_s24  }
   0x7   :  { %s402_s25 = smov [#allocation5]   ;;  %s403_s27 = smov 192  }
   0x8   :  { %s33_s26 = sshll.u32 %s402_s25, 4  ;;  %s404_s0 = smov 12   ;;  %s34_s26 = int_to_ptr.vmem [resolvable:$true] %s33_s26 }
   0x9   :  { %39 = dma.hbm_to_vmem [thread:$0]  %s32_s22, 768, %s34_s26, [#allocation6], %s403_s27, %s403_s27, %s404_s0  }
   0xa   :  { %391 = dma.done.wait [#allocation3], 128  }
   0xb   :  { %392 = vsyncadd [#allocation3], 4294967168 }
   0xc   :  { %393 = dma.done.wait [#allocation6], 768  }
   0xd   :  { %394 = vsyncadd [#allocation6], 4294966528  ;;  %v227_v0 = vld [vmem:[#allocation5 + $0x18] sm:$0xf]  ;;  %v245_v1 = vld [vmem:[#allocation5 + $0x20] sm:$0xf0] }
   0xe   :  { %v244_v2 = vld [vmem:[#allocation5 + $0x1c] sm:$0xf]  ;;  %v228_v3 = vor.u32 %v245_v1, %v227_v0  ;;  %v229_v4 = vld [vmem:[#allocation5 + $0x24] sm:$0xf0]  ;;  %v235_v5 = vld [vmem:[#allocation5 + $0x20] sm:$0xf] }
   0xf   :  { %v246_v6 = vld [vmem:[#allocation5 + $0x28] sm:$0xf0]  ;;  %v232_v7 = vor.u32 %v244_v2, %v229_v4  ;;  %v215_v9 = vld [vmem:[#allocation5] sm:$0xf]  ;;  %v241_v11 = vld [vmem:[#allocation5 + $0x4] sm:$0xf] }
  0x10   :  { %v236_v8 = vor.u32 %v246_v6, %v235_v5  ;;  %v242_v10 = vld [vmem:[#allocation5 + $0x8] sm:$0xf0]  ;;  %106 = vmatpush.bf16.msra.mxu0 %v228_v3  ;;  %v217_v13 = vld [vmem:[#allocation5 + $0xc] sm:$0xf0]  ;;  %v223_v14 = vld [vmem:[#allocation5 + $0x8] sm:$0xf] }
  0x11   :  { %v216_v12 = vor.u32 %v242_v10, %v215_v9  ;;  %v243_v15 = vld [vmem:[#allocation5 + $0x10] sm:$0xf0]  ;;  %120 = vmatpush.bf16.msra.mxu1 %v232_v7  ;;  %v220_v16 = vor.u32 %v241_v11, %v217_v13  ;;  %v240_v18 = vld [vmem:[#allocation2] sm:$0xff]  ;;  %vm96_vm0 = vcmask 261120   ;;  %s405_s1 = smov [#allocation7]   ;;  %s160_s5 = sshll.u32 %s462_s2, 4  ;;  %s161_s5 = int_to_ptr.hbm [resolvable:$true] %s160_s5 }
  0x12   :  { %134 = vmatpush.bf16.msra.mxu2 %v236_v8  ;;  %v224_v17 = vor.u32 %v243_v15, %v223_v14  ;;  %s158_s28 = sshll.u32 %s405_s1, 4  ;;  %s406_s6 = smov [#allocation8]   ;;  %s159_s28 = int_to_ptr.vmem [resolvable:$true] %s158_s28 }
  0x13   :  { %s171_s7 = sshll.u32 %s406_s6, 4  ;;  %s173_s10 = sshll.u32 %s463_s3, 4  ;;  %s172_s7 = int_to_ptr.vmem [resolvable:$true] %s171_s7  ;;  %s174_s10 = int_to_ptr.hbm [resolvable:$true] %s173_s10 }
  0x14   :  { %107 = vmatpush.bf16.msra.mxu0 %v216_v12  ;;  %s407_s11 = smov [#allocation10]   ;;  %s186_s14 = sshll.u32 %s464_s4, 4  ;;  %s187_s14 = int_to_ptr.hbm [resolvable:$true] %s186_s14 }
  0x15   :  { %121 = vmatpush.bf16.msra.mxu1 %v220_v16  ;;  %s184_s12 = sshll.u32 %s407_s11, 4  ;;  %s185_s12 = int_to_ptr.vmem [resolvable:$true] %s184_s12 }
  0x16   :  { %135 = vmatpush.bf16.msra.mxu2 %v224_v17 }
  0x17   :  { %237 = vmatmul.msk.bf16.vlgmr.msra.gmra.mxu0 %vm96_vm0, %v240_v18 }
  0x18   :  { %238 = vmatmul.msk.bf16.vlgmr.msra.gmra.mxu1 %vm96_vm0, %v240_v18 }
  0x19   :  { %239 = vmatmul.msk.bf16.vlgmr.msra.gmra.mxu2 %vm96_vm0, %v240_v18 }
  0x94   :  { %v109_v19 = vpop.f32.mrf.mxu0 }
  0x95   :  { %v123_v20 = vpop.f32.mrf.mxu1 }
  0x9c   :  { %v137_v21 = vpop.f32.mrf.mxu2  ;;  %v111_v22 = vpop.f32.mrf.mxu0 }
  0x9d   :  { %v250_v23 = vpack.c.bf16 %v111_v22, %v109_v19  ;;  %v125_v24 = vpop.f32.mrf.mxu1 }
  0x9e   :  { %v255_v25 = vpack.c.bf16 %v125_v24, %v123_v20 }
  0x9f   :  { %251 = vst [vmem:[#allocation7] sm:$0xff] %v250_v23  }
  0xa0   :  { %256 = vst [vmem:[#allocation8] sm:$0xff] %v255_v25   ;;  %166 = dma.vmem_to_hbm [thread:$0]  %s159_s28, 128, %s161_s5, [#allocation4], %s400_s23, %s400_s23, %s401_s24  }
  0xa1   :  { %179 = dma.vmem_to_hbm [thread:$0]  %s172_s7, 128, %s174_s10, [#allocation9], %s400_s23, %s400_s23, %s401_s24  }
  0xa4   :  { %v139_v26 = vpop.f32.mrf.mxu2 }
  0xa5   :  { %v260_v27 = vpack.c.bf16 %v139_v26, %v137_v21 }
  0xa7   :  { %261 = vst [vmem:[#allocation10] sm:$0xff] %v260_v27  }
  0xa8   :  { %192 = dma.vmem_to_hbm [thread:$0]  %s185_s12, 128, %s187_s14, [#allocation9], %s400_s23, %s400_s23, %s401_s24  }
  0xa9   :  { %395 = dma.done.wait [#allocation4], 128  }
  0xaa   :  { %396 = vsyncadd [#allocation4], 4294967168 }
  0xab   :  { %397 = dma.done.wait [#allocation9], 256  }
  0xac   :  { %398 = vsyncadd [#allocation9], 4294967040 }
  0xad   :  { %205 = vsyncpa [#allocation3], 1 }
  0xae   :  { %206 = vsyncpa [#allocation6], 1 }
  0xaf   :  { %207 = vsyncpa [#allocation4], 1 }
  0xb0   :  { %208 = vsyncpa [#allocation9], 1 }

</bundles_post_ra>
